<compile_context>
chip_gen: v6e
topology: v6e:2x2x1
jax: 0.10.0
libtpu: 0.0.40
codegen_flags: <defaults>
</compile_context>

<pallas_src>
import numpy as np
import jax
import jax.numpy as jnp
from jax.experimental import pallas as pl
from jax.experimental.pallas import tpu as pltpu


def _round_up(x, m):
    return (x + m - 1) // m * m


def _vmem_budget():
    """Return (per-step working-set budget, scoped vmem limit) in bytes."""
    try:
        cap = int(pltpu.get_tpu_info().vmem_capacity_bytes)
    except Exception:
        cap = 64 * 1024 * 1024          # conservative: v7x has 64 MiB per TensorCore
    # v5e/v6e (128 MiB physical) -> 96 MiB scoped limit; v7x (64 MiB) -> 48 MiB.
    limit = min(cap * 3 // 4, 96 * 1024 * 1024)
    budget = limit * 4 // 5             # headroom for compiler-internal temporaries
    return budget, limit


def _pick_batch_tile(B, per_row_bytes, budget_bytes):
    """Largest batch tile (multiple of 32) whose pipelined footprint fits budget."""
    b_ceil = _round_up(max(B, 1), 8)
    tb = int(budget_bytes // max(per_row_bytes, 1))
    tb = max(32, min(tb, 1024) // 32 * 32)      # 32: sublane packing for f32/bf16/i8
    if b_ceil >= 64:
        # Keep >= 2 grid steps so both v7x TensorCores pull from HBM.
        tb = min(tb, _round_up(-(-b_ceil // 2), 32))
    if tb >= b_ceil:
        return b_ceil                           # whole (8-padded) batch, full-dim block
    return tb


def _make_boost_kernel(nfc, ksize, l_out):
    """Fused stack + Conv1d(nfc->1, ksize, bias=False) over the class axis."""

    def kernel(w_ref, *refs):
        # refs = (x_ref_0, ..., x_ref_{nfc-1}, o_ref)
        x_refs = refs[:nfc]
        o_ref = refs[nfc]
        acc = None
        for k in range(ksize):
            # Combine all nfc branches for tap k at full, lane-aligned width:
            # scalar SMEM weight broadcast * lane-dense VPU FMA in f32.
            s = None
            for i in range(nfc):
                term = w_ref[i, k] * x_refs[i][...].astype(jnp.float32)
                s = term if s is None else s + term
            # One shifted window per tap (identity when k == 0 and l_out == C).
            # A static slice at a lane offset lowers to an XLU lane-rotate that
            # co-issues with the VPU work above (same effect as pltpu.roll).
            tap = s[:, k:k + l_out]
            acc = tap if acc is None else acc + tap
        o_ref[...] = acc.astype(o_ref.dtype)

    return kernel


def _boost_reduce(x_list, w, ksize):
    """pred[b, j] = sum_{i,k} w[i,k] * x_i[b, j+k]  (cross-correlation, no pad)."""
    nfc = len(x_list)
    B, nclass = x_list[0].shape
    l_out = nclass - ksize + 1
    in_dtype = x_list[0].dtype
    in_bytes = jnp.dtype(in_dtype).itemsize
    out_bytes = in_bytes

    budget, vmem_limit = _vmem_budget()
    # Per batch-row VMEM footprint of one grid step: double-buffered input
    # blocks + double-buffered output block + slack for f32 value temporaries.
    per_row = 2 * nfc * nclass * in_bytes + 2 * l_out * out_bytes + 16 * nclass
    tb = _pick_batch_tile(B, per_row, budget)

    # Pad the batch to a tile multiple (no remainder rows silently dropped,
    # no giant un-pipelined full-batch tile); slice back below.
    B_pad = _round_up(B, tb)
    if B_pad != B:
        x_list = [jnp.pad(xi, ((0, B_pad - B), (0, 0))) for xi in x_list]

    grid = (B_pad // tb,)
    x_spec = pl.BlockSpec((tb, nclass), lambda b: (b, 0))
    out_spec = pl.BlockSpec((tb, l_out), lambda b: (b, 0))
    w_spec = pl.BlockSpec(memory_space=pltpu.MemorySpace.SMEM)  # tiny weight in SMEM

    out = pl.pallas_call(
        _make_boost_kernel(nfc, ksize, l_out),
        out_shape=jax.ShapeDtypeStruct((B_pad, l_out), in_dtype),
        grid=grid,
        in_specs=[w_spec] + [x_spec] * nfc,
        out_specs=out_spec,
        compiler_params=pltpu.CompilerParams(
            dimension_semantics=("parallel",),          # megacore sharding on v7x
            vmem_limit_bytes=int(vmem_limit)),
    )(w.astype(jnp.float32), *x_list)

    return out[:B] if B_pad != B else out


def autoboost_forward(x, params, *, xfc, lfc, ksize=1, nclass=1000,
                      method='none', active_fc=False):
    """Functional equivalent of AutoBoost.forward."""
    METHOD = ('none', 'conv', 'soft', 'hard')
    assert method in METHOD, 'Unknown Param <method> %s' % method
    if not active_fc:
        return x
    assert isinstance(x, (list, tuple))
    pred = []
    if method == 'none':
        return x
    elif method == 'conv':
        nfc = xfc + lfc
        assert len(x) == nfc
        w = params['conv_w'].reshape(nfc, ksize)          # nn.Conv1d weight (1, nfc, k)
        pred.append(_boost_reduce(list(x), w, ksize))
    elif method == 'soft':
        nfc = len(x)
        w = jnp.full((nfc, 1), 1.0 / nfc, jnp.float32)    # soft = uniform-weight conv
        pred.append(_boost_reduce(list(x), w, 1))
    else:
        # 'hard' raises NotImplementedError in the reference module as well.
        raise NotImplementedError('Not Implemented !')
    return pred


def init_params(key, nfc, ksize):
    """Deterministic Conv1d(nfc, 1, ksize, bias=False) weight."""
    w = jax.random.normal(key, (1, nfc, ksize), jnp.float32) / np.sqrt(nfc * ksize)
    return dict(conv_w=w)


def _ref_conv_np(x_list, w_np, ksize):
    """Host float64 reference: out[b,j] = sum_{i,k} w[i,k] * x_i[b, j+k]."""
    xs = [np.asarray(xi.astype(jnp.float32), dtype=np.float64) for xi in x_list]
    nclass = xs[0].shape[1]
    l_out = nclass - ksize + 1
    out = np.zeros((xs[0].shape[0], l_out), np.float64)
    for i, xi in enumerate(xs):
        for k in range(ksize):
            out += w_np[i, k] * xi[:, k:k + l_out]
    return out


if __name__ == "__main__":
    key = jax.random.PRNGKey(0)
    B, nclass = 64, 512          # nclass multiple of 128 -> lane-dense tiles
    xfc, lfc = 4, 4
    nfc = xfc + lfc

    keys = jax.random.split(key, nfc + 3)
    x = [jax.random.normal(keys[i], (B, nclass), jnp.float32) for i in range(nfc)]

    # --- method='conv', ksize=1 (module default; lane-dense store path) ------
    params1 = init_params(keys[nfc], nfc, 1)
    out1 = autoboost_forward(x, params1, xfc=xfc, lfc=lfc, ksize=1,
                             nclass=nclass, method='conv', active_fc=True)
    jax.block_until_ready(out1)
    ref1 = _ref_conv_np(x, np.asarray(params1['conv_w'][0], np.float64), 1)
    np.testing.assert_allclose(np.asarray(out1[0], np.float64), ref1,
                               rtol=1e-4, atol=1e-4)

    # --- method='conv', ksize=3 (general kernel-size / shifted-tap path) -----
    params3 = init_params(keys[nfc + 1], nfc, 3)
    out3 = autoboost_forward(x, params3, xfc=xfc, lfc=lfc, ksize=3,
                             nclass=nclass, method='conv', active_fc=True)
    jax.block_until_ready(out3)
    ref3 = _ref_conv_np(x, np.asarray(params3['conv_w'][0], np.float64), 3)
    np.testing.assert_allclose(np.asarray(out3[0], np.float64), ref3,
                               rtol=1e-4, atol=1e-4)

    # --- method='soft' --------------------------------------------------------
    outs = autoboost_forward(x, {}, xfc=xfc, lfc=lfc, method='soft', active_fc=True)
    jax.block_until_ready(outs)
    ref_soft = sum(np.asarray(xi, np.float64) for xi in x) / nfc
    np.testing.assert_allclose(np.asarray(outs[0], np.float64), ref_soft,
                               rtol=1e-5, atol=1e-5)

    # --- bf16 inputs (halved HBM read bytes; f32 accumulation inside) --------
    x_bf = [xi.astype(jnp.bfloat16) for xi in x]
    out_bf = autoboost_forward(x_bf, params1, xfc=xfc, lfc=lfc, ksize=1,
                               nclass=nclass, method='conv', active_fc=True)
    jax.block_until_ready(out_bf)
    ref_bf = _ref_conv_np(x_bf, np.asarray(params1['conv_w'][0], np.float64), 1)
    np.testing.assert_allclose(
        np.asarray(out_bf[0].astype(jnp.float32), np.float64), ref_bf,
        rtol=2e-2, atol=2e-2)   # final bf16 store quantizes the f32 accumulator

    # --- batch not a multiple of the tile (wrapper pads, then slices) --------
    B2 = 50
    keys2 = jax.random.split(keys[nfc + 2], nfc)
    x2 = [jax.random.normal(keys2[i], (B2, nclass), jnp.float32) for i in range(nfc)]
    out2 = autoboost_forward(x2, params1, xfc=xfc, lfc=lfc, ksize=1,
                             nclass=nclass, method='conv', active_fc=True)
    jax.block_until_ready(out2)
    ref2 = _ref_conv_np(x2, np.asarray(params1['conv_w'][0], np.float64), 1)
    assert out2[0].shape == (B2, nclass)
    np.testing.assert_allclose(np.asarray(out2[0], np.float64), ref2,
                               rtol=1e-4, atol=1e-4)

    # --- inactive / method='none' -> identity pass-through (no kernel) -------
    ident = autoboost_forward(x, {}, xfc=xfc, lfc=lfc, method='none',
                              active_fc=False)
    assert ident is x

    print("KERNEL_OK")
</pallas_src>

<mosaic_0001>
module attributes {stable_mosaic.version = 11 : i64} {
  func.func @kernel(%arg0: i32, %arg1: memref<8x1xf32, #tpu.memory_space<smem>>, %arg2: memref<32x512xf32, #tpu.memory_space<vmem>>, %arg3: memref<32x512xf32, #tpu.memory_space<vmem>>, %arg4: memref<32x512xf32, #tpu.memory_space<vmem>>, %arg5: memref<32x512xf32, #tpu.memory_space<vmem>>, %arg6: memref<32x512xf32, #tpu.memory_space<vmem>>, %arg7: memref<32x512xf32, #tpu.memory_space<vmem>>, %arg8: memref<32x512xf32, #tpu.memory_space<vmem>>, %arg9: memref<32x512xf32, #tpu.memory_space<vmem>>, %arg10: memref<32x512xf32, #tpu.memory_space<vmem>>) attributes {dimension_semantics = [#tpu.dimension_semantics<parallel>], iteration_bounds = array<i64: 2>, scalar_prefetch = 0 : i64, scratch_operands = 0 : i64, tpu.core_type = #tpu.core_type<tc>, window_params = [{transform_indices = @transform_0, window_bounds = array<i64: 8, 1>}, {transform_indices = @transform_1, window_bounds = array<i64: 32, 512>}, {transform_indices = @transform_2, window_bounds = array<i64: 32, 512>}, {transform_indices = @transform_3, window_bounds = array<i64: 32, 512>}, {transform_indices = @transform_4, window_bounds = array<i64: 32, 512>}, {transform_indices = @transform_5, window_bounds = array<i64: 32, 512>}, {transform_indices = @transform_6, window_bounds = array<i64: 32, 512>}, {transform_indices = @transform_7, window_bounds = array<i64: 32, 512>}, {transform_indices = @transform_8, window_bounds = array<i64: 32, 512>}, {transform_indices = @transform_9, window_bounds = array<i64: 32, 512>}]} {
    %c0 = arith.constant 0 : index
    %c0_0 = arith.constant 0 : index
    %0 = memref.load %arg1[%c0, %c0_0] : memref<8x1xf32, #tpu.memory_space<smem>>
    %c0_1 = arith.constant 0 : index
    %c0_2 = arith.constant 0 : index
    %1 = vector.load %arg2[%c0_1, %c0_2] : memref<32x512xf32, #tpu.memory_space<vmem>>, vector<32x512xf32>
    %2 = vector.broadcast %0 : f32 to vector<32x512xf32>
    %3 = arith.mulf %2, %1 : vector<32x512xf32>
    %c1 = arith.constant 1 : index
    %c0_3 = arith.constant 0 : index
    %4 = memref.load %arg1[%c1, %c0_3] : memref<8x1xf32, #tpu.memory_space<smem>>
    %c0_4 = arith.constant 0 : index
    %c0_5 = arith.constant 0 : index
    %5 = vector.load %arg3[%c0_4, %c0_5] : memref<32x512xf32, #tpu.memory_space<vmem>>, vector<32x512xf32>
    %6 = vector.broadcast %4 : f32 to vector<32x512xf32>
    %7 = arith.mulf %6, %5 : vector<32x512xf32>
    %8 = arith.addf %3, %7 : vector<32x512xf32>
    %c2 = arith.constant 2 : index
    %c0_6 = arith.constant 0 : index
    %9 = memref.load %arg1[%c2, %c0_6] : memref<8x1xf32, #tpu.memory_space<smem>>
    %c0_7 = arith.constant 0 : index
    %c0_8 = arith.constant 0 : index
    %10 = vector.load %arg4[%c0_7, %c0_8] : memref<32x512xf32, #tpu.memory_space<vmem>>, vector<32x512xf32>
    %11 = vector.broadcast %9 : f32 to vector<32x512xf32>
    %12 = arith.mulf %11, %10 : vector<32x512xf32>
    %13 = arith.addf %8, %12 : vector<32x512xf32>
    %c3 = arith.constant 3 : index
    %c0_9 = arith.constant 0 : index
    %14 = memref.load %arg1[%c3, %c0_9] : memref<8x1xf32, #tpu.memory_space<smem>>
    %c0_10 = arith.constant 0 : index
    %c0_11 = arith.constant 0 : index
    %15 = vector.load %arg5[%c0_10, %c0_11] : memref<32x512xf32, #tpu.memory_space<vmem>>, vector<32x512xf32>
    %16 = vector.broadcast %14 : f32 to vector<32x512xf32>
    %17 = arith.mulf %16, %15 : vector<32x512xf32>
    %18 = arith.addf %13, %17 : vector<32x512xf32>
    %c4 = arith.constant 4 : index
    %c0_12 = arith.constant 0 : index
    %19 = memref.load %arg1[%c4, %c0_12] : memref<8x1xf32, #tpu.memory_space<smem>>
    %c0_13 = arith.constant 0 : index
    %c0_14 = arith.constant 0 : index
    %20 = vector.load %arg6[%c0_13, %c0_14] : memref<32x512xf32, #tpu.memory_space<vmem>>, vector<32x512xf32>
    %21 = vector.broadcast %19 : f32 to vector<32x512xf32>
    %22 = arith.mulf %21, %20 : vector<32x512xf32>
    %23 = arith.addf %18, %22 : vector<32x512xf32>
    %c5 = arith.constant 5 : index
    %c0_15 = arith.constant 0 : index
    %24 = memref.load %arg1[%c5, %c0_15] : memref<8x1xf32, #tpu.memory_space<smem>>
    %c0_16 = arith.constant 0 : index
    %c0_17 = arith.constant 0 : index
    %25 = vector.load %arg7[%c0_16, %c0_17] : memref<32x512xf32, #tpu.memory_space<vmem>>, vector<32x512xf32>
    %26 = vector.broadcast %24 : f32 to vector<32x512xf32>
    %27 = arith.mulf %26, %25 : vector<32x512xf32>
    %28 = arith.addf %23, %27 : vector<32x512xf32>
    %c6 = arith.constant 6 : index
    %c0_18 = arith.constant 0 : index
    %29 = memref.load %arg1[%c6, %c0_18] : memref<8x1xf32, #tpu.memory_space<smem>>
    %c0_19 = arith.constant 0 : index
    %c0_20 = arith.constant 0 : index
    %30 = vector.load %arg8[%c0_19, %c0_20] : memref<32x512xf32, #tpu.memory_space<vmem>>, vector<32x512xf32>
    %31 = vector.broadcast %29 : f32 to vector<32x512xf32>
    %32 = arith.mulf %31, %30 : vector<32x512xf32>
    %33 = arith.addf %28, %32 : vector<32x512xf32>
    %c7 = arith.constant 7 : index
    %c0_21 = arith.constant 0 : index
    %34 = memref.load %arg1[%c7, %c0_21] : memref<8x1xf32, #tpu.memory_space<smem>>
    %c0_22 = arith.constant 0 : index
    %c0_23 = arith.constant 0 : index
    %35 = vector.load %arg9[%c0_22, %c0_23] : memref<32x512xf32, #tpu.memory_space<vmem>>, vector<32x512xf32>
    %36 = vector.broadcast %34 : f32 to vector<32x512xf32>
    %37 = arith.mulf %36, %35 : vector<32x512xf32>
    %38 = arith.addf %33, %37 : vector<32x512xf32>
    %c0_24 = arith.constant 0 : index
    %c0_25 = arith.constant 0 : index
    %39 = vector.load %arg10[%c0_24, %c0_25] : memref<32x512xf32, #tpu.memory_space<vmem>>, vector<32x512xf32>
    tpu.vector_store %arg10[%c0_24, %c0_25], %38 {strides = array<i32>} : memref<32x512xf32, #tpu.memory_space<vmem>>, vector<32x512xf32>,
    return
  }
  func.func @transform_0(%arg0: i32) -> (i32, i32) {
    %c0_i32 = arith.constant 0 : i32
    %c0_i32_0 = arith.constant 0 : i32
    %c0_i32_1 = arith.constant 0 : i32
    return %c0_i32, %c0_i32_0 : i32, i32
  }
  func.func @transform_1(%arg0: i32) -> (i32, i32) {
    %c0_i32 = arith.constant 0 : i32
    %c0_i32_0 = arith.constant 0 : i32
    return %arg0, %c0_i32 : i32, i32
  }
  func.func @transform_2(%arg0: i32) -> (i32, i32) {
    %c0_i32 = arith.constant 0 : i32
    %c0_i32_0 = arith.constant 0 : i32
    return %arg0, %c0_i32 : i32, i32
  }
  func.func @transform_3(%arg0: i32) -> (i32, i32) {
    %c0_i32 = arith.constant 0 : i32
    %c0_i32_0 = arith.constant 0 : i32
    return %arg0, %c0_i32 : i32, i32
  }
  func.func @transform_4(%arg0: i32) -> (i32, i32) {
    %c0_i32 = arith.constant 0 : i32
    %c0_i32_0 = arith.constant 0 : i32
    return %arg0, %c0_i32 : i32, i32
  }
  func.func @transform_5(%arg0: i32) -> (i32, i32) {
    %c0_i32 = arith.constant 0 : i32
    %c0_i32_0 = arith.constant 0 : i32
    return %arg0, %c0_i32 : i32, i32
  }
  func.func @transform_6(%arg0: i32) -> (i32, i32) {
    %c0_i32 = arith.constant 0 : i32
    %c0_i32_0 = arith.constant 0 : i32
    return %arg0, %c0_i32 : i32, i32
  }
  func.func @transform_7(%arg0: i32) -> (i32, i32) {
    %c0_i32 = arith.constant 0 : i32
    %c0_i32_0 = arith.constant 0 : i32
    return %arg0, %c0_i32 : i32, i32
  }
  func.func @transform_8(%arg0: i32) -> (i32, i32) {
    %c0_i32 = arith.constant 0 : i32
    %c0_i32_0 = arith.constant 0 : i32
    return %arg0, %c0_i32 : i32, i32
  }
  func.func @transform_9(%arg0: i32) -> (i32, i32) {
    %c0_i32 = arith.constant 0 : i32
    %c0_i32_0 = arith.constant 0 : i32
    return %arg0, %c0_i32 : i32, i32
  }
}

</mosaic_0001>

<bundles_post_ra>
// kernel: tpu_custom_call.1
= control target key start
LH: loop header
LB: loop body
LE: loop exit
PB: predicated region body
PF: predicated region fallthrough
CT: control target
= control target key end

     0   :  { %s2656_s0 = inlined_call_operand.vmem [shape: f32[8,1], index: 0, kind: input, shape index: {}]   ;;  %s2657_s1 = inlined_call_operand.hbm [shape: f32[64,512], index: 1, kind: input, shape index: {}]   ;;  %s2658_s2 = inlined_call_operand.hbm [shape: f32[64,512], index: 2, kind: input, shape index: {}]   ;;  %s2659_s3 = inlined_call_operand.hbm [shape: f32[64,512], index: 3, kind: input, shape index: {}]   ;;  %s2660_s4 = inlined_call_operand.hbm [shape: f32[64,512], index: 4, kind: input, shape index: {}]   ;;  %s2661_s5 = inlined_call_operand.hbm [shape: f32[64,512], index: 5, kind: input, shape index: {}]   ;;  %s2662_s6 = inlined_call_operand.hbm [shape: f32[64,512], index: 6, kind: input, shape index: {}]   ;;  %s2663_s7 = inlined_call_operand.hbm [shape: f32[64,512], index: 7, kind: input, shape index: {}]   ;;  %s2664_s8 = inlined_call_operand.hbm [shape: f32[64,512], index: 8, kind: input, shape index: {}]   ;;  %s2665_s9 = inlined_call_operand.hbm [shape: f32[64,512], index: 9, kind: output, shape index: {}]  }
   0x1   :  { %2684 = sst [smem:[#allocation31_spill]] %s2656_s0 }
   0x2   :  { %2685 = sst [smem:[#allocation32_spill]] %s2657_s1 }
   0x3   :  { %2686 = sst [smem:[#allocation33_spill]] %s2658_s2 }
   0x4   :  { %2687 = sst [smem:[#allocation34_spill]] %s2659_s3 }
   0x5   :  { %2688 = sst [smem:[#allocation35_spill]] %s2660_s4 }
   0x6   :  { %2689 = sst [smem:[#allocation36_spill]] %s2662_s6 }
   0x7   :  { %2690 = sst [smem:[#allocation37_spill]] %s2665_s9 }
   0x8   :  { %14 = vsyncpa [#allocation5], 0 }
   0x9   :  { %15 = vsyncpa [#allocation3], 0 }
   0xa   :  { %17 = vsyncpa [#allocation3 + $0x1], 0 }
   0xb   :  { %18 = vsyncpa [#allocation8], 0 }
   0xc   :  { %20 = vsyncpa [#allocation8 + $0x1], 0 }
   0xd   :  { %21 = vsyncpa [#allocation11], 0 }
   0xe   :  { %23 = vsyncpa [#allocation11 + $0x1], 0 }
   0xf   :  { %24 = vsyncpa [#allocation14], 0 }
  0x10   :  { %26 = vsyncpa [#allocation14 + $0x1], 0 }
  0x11   :  { %27 = vsyncpa [#allocation17], 0 }
  0x12   :  { %29 = vsyncpa [#allocation17 + $0x1], 0 }
  0x13   :  { %30 = vsyncpa [#allocation4], 0 }
  0x14   :  { %32 = vsyncpa [#allocation4 + $0x1], 0  ;;  %s1868_s30 = smov 0   ;;  %s1870_s10 = smov 0  }
  0x15   :  { %s1872_s11 = smov 0   ;;  %s1874_s12 = smov 0  }
  0x16 LB: > { %2691 = sst [smem:[#allocation26_spill]] %s1798_s11  ;;  %s1889_s13 = sadd.s32 1, %s1802_s12   ;;  %s1802_s12 = sphi %s1874_s12, %s2727_s12   ;;  %s1798_s11 = sphi %s1872_s11, %s2729_s11   ;;  %s1794_s10 = sphi %s1870_s10, %s2731_s10   ;;  %s1790_s30 = sphi %s1868_s30, %s2730_s30  }
  0x17   : > { %2692 = sst [smem:[#allocation27_spill]] %s1802_s12  ;;  %s66_s14 = sadd.s32 1, %s1798_s11 }
  0x18   : > { %2693 = sst [smem:[#allocation28_spill]] %s1889_s13  ;;  %s63_s15 = ssub.s32 %s1802_s12, %s1889_s13 }
  0x19   : > { %p2666_p0 = scmp.ne.s32.totalorder %s1798_s11, %s1794_s10  ;;  %p64_p1 = scmp.eq.s32.totalorder %s63_s15, 0 }
  0x1a   : > { %p74_p2 = scmp.eq.s32.totalorder %s1802_s12, 0  ;;  %p1439_p4 = scmp.lt.s32.totalorder %s1802_s12, 2 }
  0x1b   : > { %s1900_s16 = scalar_select %p64_p1, %s1798_s11, %s66_s14  }
  0x1c   : > { %p75_p5 = por %p74_p2, %p2666_p0  ;;  %s1906_s17 = sand.u32 1, %s1798_s11  }
  0x1d   : > { %2694 = sst [smem:[#allocation29_spill]] %s1900_s16  ;;  %s1909_s18 = sshll.u32 %s1906_s17, 7 }
  0x1e   : > { %s1912_s19 = sshll.u32 %s1802_s12, 11  ;;  %p1914_p6 = pnand %p1439_p4, %p75_p5 }
  0x1f   : > { %s1919_s21 = sand.u32 1, %s1802_s12   ;;  %s2696_s2 = sld [smem:[#allocation33_spill]] }
  0x20   : > { %s348_s25 = scalar_lea.vmem [#allocation7], %s1909_s18  ;;  %p1935_p8 = pneg %p1914_p6 }
  0x21   : > { %s356_s26 = sshll.u32 %s348_s25, 4  ;;  %s1928_s26 = int_to_ptr.vmem [resolvable:$true] %s356_s26 }
  0x25   : > { %s1925_s24 = scalar_lea.hbm %s2696_s2, %s1912_s19  ;;  %s1484_s22 = scalar_lea.hbm %s2696_s2, 4096 }
  0x26   : > { %s1479_s28 = scalar_lea.hbm %s1925_s24, 2048  ;;  %p1485_p11 = scmp.lt.s32.totalorder %s1925_s24, %s2696_s2 }
  0x27   : > { %p1480_p7 = scmp.ne.s32.totalorder %s1925_s24, %s1479_s28  ;;  %p1486_p12 = scmp.lt.s32.totalorder %s1484_s22, %s1479_s28 }
  0x29   : > { %p1482_p9 = pnand %p1935_p8, %p1480_p7  ;;  %p1487_p13 = por %p1486_p12, %p1485_p11 }
  0x2b   : > { %p1483_p10 = pneg %p1482_p9 }
  0x2d   : > { %p1488_p1 = pnand %p1487_p13, %p1483_p10 }
  0x2f   : > { %1491 = shalt.err (!%p1488_p1)
}
  0x30   : > { %s1492_s27 = scalar_lea.vmem %s1928_s26, 2048  ;;  %s1804_s16 = smov [#allocation7]  }
  0x31   : > { %p1493_p2 = scmp.ne.s32.totalorder %s1928_s26, %s1492_s27  ;;  %s1497_s14 = sshll.u32 %s1804_s16, 4  ;;  %s1498_s14 = int_to_ptr.vmem [resolvable:$false] %s1497_s14 }
  0x32   : > { %s1499_s15 = scalar_lea.vmem %s1498_s14, 4096  ;;  %p1500_p7 = scmp.lt.s32.totalorder %s1928_s26, %s1498_s14 }
  0x33   : > { %p1495_p4 = pnand %p1493_p2, %p1935_p8  ;;  %p1501_p9 = scmp.lt.s32.totalorder %s1499_s15, %s1492_s27 }
  0x35   : > { %p1496_p5 = pneg %p1495_p4  ;;  %p1502_p3 = por %p1501_p9, %p1500_p7 }
  0x37   : > { %p1503_p0 = pnand %p1502_p3, %p1496_p5 }
  0x39   : > { %1506 = shalt.err (!%p1503_p0)
}
  0x3a   : > { %s2672_s28 = smov 512   ;;  %s2674_s22 = smov 32  }
  0x3b   : > { %s2698_s16 = scalar_lea.sflag [#allocation8], %s1919_s21  ;;  %s2699_s4 = sld [smem:[#allocation35_spill]] }
  0x3c   : > { %1415 = dma.hbm_to_vmem [thread:$0]  (!%p1914_p6), %s1925_s24, 2048, %s1928_s26, %s2698_s16, %s2672_s28, %s2672_s28, %s2674_s22  }
  0x3d   : > { %s392_s14 = scalar_lea.vmem [#allocation10], %s1909_s18  ;;  %s2670_s2 = scalar_lea.sflag [#allocation11], %s1919_s21 }
  0x3e   : > { %s400_s15 = sshll.u32 %s392_s14, 4  ;;  %s1969_s15 = int_to_ptr.vmem [resolvable:$true] %s400_s15 }
  0x41   : > { %s1966_s25 = scalar_lea.hbm %s2699_s4, %s1912_s19  ;;  %s1512_s26 = scalar_lea.hbm %s2699_s4, 4096 }
  0x42   : > { %s1507_s13 = scalar_lea.hbm %s1966_s25, 2048  ;;  %p1513_p11 = scmp.lt.s32.totalorder %s1966_s25, %s2699_s4 }
  0x43   : > { %p1508_p0 = scmp.ne.s32.totalorder %s1966_s25, %s1507_s13  ;;  %p1514_p12 = scmp.lt.s32.totalorder %s1512_s26, %s1507_s13 }
  0x45   : > { %p1510_p3 = pnand %p1508_p0, %p1935_p8  ;;  %p1515_p13 = por %p1514_p12, %p1513_p11 }
  0x47   : > { %p1511_p10 = pneg %p1510_p3 }
  0x49   : > { %p1516_p1 = pnand %p1515_p13, %p1511_p10 }
  0x4b   : > { %1519 = shalt.err (!%p1516_p1)
}
  0x4c   : > { %s1520_s23 = scalar_lea.vmem %s1969_s15, 2048  ;;  %s1807_s14 = smov [#allocation10]  }
  0x4d   : > { %p1521_p2 = scmp.ne.s32.totalorder %s1969_s15, %s1520_s23  ;;  %s1525_s9 = sshll.u32 %s1807_s14, 4  ;;  %s1526_s9 = int_to_ptr.vmem [resolvable:$false] %s1525_s9 }
  0x4e   : > { %s1527_s24 = scalar_lea.vmem %s1526_s9, 4096  ;;  %p1528_p7 = scmp.lt.s32.totalorder %s1969_s15, %s1526_s9 }
  0x4f   : > { %p1523_p4 = pnand %p1521_p2, %p1935_p8  ;;  %p1529_p9 = scmp.lt.s32.totalorder %s1527_s24, %s1520_s23 }
  0x51   : > { %p1524_p5 = pneg %p1523_p4  ;;  %p1530_p0 = por %p1529_p9, %p1528_p7 }
  0x53   : > { %p1531_p3 = pnand %p1530_p0, %p1524_p5 }
  0x55   : > { %1534 = shalt.err (!%p1531_p3)
}
  0x56   : > { %1421 = dma.hbm_to_vmem [thread:$0]  (!%p1914_p6), %s1966_s25, 2048, %s1969_s15, %s2670_s2, %s2672_s28, %s2672_s28, %s2674_s22  }
  0x57   : > { %s2700_s6 = sld [smem:[#allocation36_spill]]  ;;  %s436_s27 = scalar_lea.vmem [#allocation13], %s1909_s18 }
  0x58   : > { %s444_s23 = sshll.u32 %s436_s27, 4  ;;  %s2671_s14 = scalar_lea.sflag [#allocation14], %s1919_s21  ;;  %s2004_s23 = int_to_ptr.vmem [resolvable:$true] %s444_s23 }
  0x5d   : > { %s2001_s16 = scalar_lea.hbm %s2700_s6, %s1912_s19  ;;  %s1540_s15 = scalar_lea.hbm %s2700_s6, 4096 }
  0x5e   : > { %s1535_s9 = scalar_lea.hbm %s2001_s16, 2048  ;;  %p1541_p13 = scmp.lt.s32.totalorder %s2001_s16, %s2700_s6 }
  0x5f   : > { %p1536_p10 = scmp.ne.s32.totalorder %s2001_s16, %s1535_s9  ;;  %p1542_p1 = scmp.lt.s32.totalorder %s1540_s15, %s1535_s9 }
  0x61   : > { %p1538_p11 = pnand %p1536_p10, %p1935_p8  ;;  %p1543_p2 = por %p1542_p1, %p1541_p13 }
  0x63   : > { %p1539_p12 = pneg %p1538_p11 }
  0x65   : > { %p1544_p4 = pnand %p1543_p2, %p1539_p12 }
  0x67   : > { %1547 = shalt.err (!%p1544_p4)
}
  0x68   : > { %s1548_s27 = scalar_lea.vmem %s2004_s23, 2048  ;;  %s1808_s2 = smov [#allocation13]  }
  0x69   : > { %p1549_p5 = scmp.ne.s32.totalorder %s2004_s23, %s1548_s27  ;;  %s1553_s24 = sshll.u32 %s1808_s2, 4  ;;  %s1554_s24 = int_to_ptr.vmem [resolvable:$false] %s1553_s24 }
  0x6a   : > { %s1555_s25 = scalar_lea.vmem %s1554_s24, 4096  ;;  %p1556_p0 = scmp.lt.s32.totalorder %s2004_s23, %s1554_s24 }
  0x6b   : > { %p1551_p7 = pnand %p1549_p5, %p1935_p8  ;;  %p1557_p3 = scmp.lt.s32.totalorder %s1555_s25, %s1548_s27 }
  0x6d   : > { %p1552_p9 = pneg %p1551_p7  ;;  %p1558_p10 = por %p1557_p3, %p1556_p0 }
  0x6f   : > { %p1559_p11 = pnand %p1558_p10, %p1552_p9 }
  0x71   : > { %1562 = shalt.err (!%p1559_p11)
}
  0x72   : > { %1427 = dma.hbm_to_vmem [thread:$0]  (!%p1914_p6), %s2001_s16, 2048, %s2004_s23, %s2671_s14, %s2672_s28, %s2672_s28, %s2674_s22  }
  0x73   : > { %s2033_s2 = sadd.s32 4294967295, %s1802_s12   ;;  %s1305_s9 = sadd.s32 4294967294, %s1802_s12  }
  0x74   : > { %p79_p12 = scmp.ne.s32.totalorder %s1794_s10, %s1790_s30  ;;  %p2677_p13 = scmp.eq.s32.totalorder %s2033_s2, 0 }
  0x75   : > { %p285_p1 = scmp.eq.s32.totalorder %s2033_s2, 1  ;;  %p291_p2 = scmp.eq.s32.totalorder %s1305_s9, 1 }
  0x76   : > { %p2042_p4 = por %p2677_p13, %p79_p12  ;;  %p1306_p5 = scmp.ge.s32.totalorder %s1802_s12, 1 }
  0x77   : > { %p2702_p7 = scmp.ne.s32.totalorder %s1798_s11, %s1794_s10  ;;  %p2054_p0 = por %p291_p2, %p79_p12 }
  0x78   : > { %s2701_s15 = scalar_select %p2042_p4, 1, 0 }
  0x79   : > { %p2050_p9 = por %p285_p1, %p2702_p7  ;;  %p298_p3 = scmp.lt.s32.totalorder %s1802_s12, 3 }
  0x7a   : > { %s2704_s23 = scalar_select %p2054_p0, 1, 0 }
  0x7b   : > { %s2703_s16 = scalar_select %p2050_p9, 1, 0 }
  0x7c   : > { %2705 = sst [smem:[#allocation30_spill]] %s2704_s23  ;;  %p2062_p10 = pnand %p1306_p5, %p298_p3 }
  0x7d   : > { %s2706_s0 = sld [smem:[#allocation31_spill]]  ;;  %s326_s28 = scalar_lea.vmem [#allocation6], %s1909_s18 }
  0x7e   : > { %s2707_s24 = scalar_select %p2062_p10, 1, 0 }
  0x7f   : > { %p1405_p11 = pneg %p2062_p10  ;;  %s2708_s1 = sld [smem:[#allocation32_spill]] }
  0x80   : > { %s334_s13 = sshll.u32 %s326_s28, 4  ;;  %s323_s22 = scalar_lea.sflag [#allocation3], %s1906_s17  ;;  %s2083_s13 = int_to_ptr.vmem [resolvable:$true] %s334_s13 }
  0x81   : > { %p2079_p12 = pnand %p1405_p11, %p2677_p13 }
  0x83   : > { %s311_s27 = sshll.u32 %s2706_s0, 4  ;;  %s2066_s27 = int_to_ptr.vmem [resolvable:$true] %s311_s27 }
  0x84   : > { %s2709_s26 = scalar_select %p2079_p12, 1, 0 }
  0x85   : > { %s2074_s14 = scalar_lea.hbm %s2708_s1, %s1912_s19  ;;  %s1568_s4 = scalar_lea.hbm %s2708_s1, 4096 }
  0x86   : > { %s1563_s0 = scalar_lea.hbm %s2074_s14, 2048  ;;  %p1569_p7 = scmp.lt.s32.totalorder %s2074_s14, %s2708_s1 }
  0x87   : > { %p1564_p1 = scmp.ne.s32.totalorder %s2074_s14, %s1563_s0  ;;  %p1570_p3 = scmp.lt.s32.totalorder %s1568_s4, %s1563_s0 }
  0x89   : > { %p1566_p2 = pnand %p1564_p1, %p1935_p8  ;;  %p1571_p11 = por %p1570_p3, %p1569_p7 }
  0x8b   : > { %p1567_p5 = pneg %p1566_p2 }
  0x8d   : > { %p1572_p13 = pnand %p1571_p11, %p1567_p5 }
  0x8f   : > { %1575 = shalt.err (!%p1572_p13)
}
  0x90   : > { %s1576_s28 = scalar_lea.vmem %s2083_s13, 2048  ;;  %s1809_s12 = smov [#allocation6]  }
  0x91   : > { %p1577_p0 = scmp.ne.s32.totalorder %s2083_s13, %s1576_s28  ;;  %s1581_s25 = sshll.u32 %s1809_s12, 4  ;;  %s1582_s25 = int_to_ptr.vmem [resolvable:$false] %s1581_s25 }
  0x92   : > { %s1583_s9 = scalar_lea.vmem %s1582_s25, 4096  ;;  %p1584_p9 = scmp.lt.s32.totalorder %s2083_s13, %s1582_s25 }
  0x93   : > { %p1579_p1 = pnand %p1577_p0, %p1935_p8  ;;  %p1585_p4 = scmp.lt.s32.totalorder %s1583_s9, %s1576_s28 }
  0x95   : > { %p1580_p2 = pneg %p1579_p1  ;;  %p1586_p10 = por %p1585_p4, %p1584_p9 }
  0x97   : > { %p1587_p12 = pnand %p1586_p10, %p1580_p2 }
  0x99   : > { %1590 = shalt.err (!%p1587_p12)
}
  0x9a   : > { %s2710_s0 = smov 32   ;;  %s2711_s4 = smov 512  }
  0x9b   : > { %1412 = dma.hbm_to_vmem [thread:$0]  (!%p1914_p6), %s2074_s14, 2048, %s2083_s13, %s323_s22, %s2711_s4, %s2711_s4, %s2710_s0  }
  0x9c   : > { %s2712_s3 = sld [smem:[#allocation34_spill]]  ;;  %s1591_s28 = scalar_lea.vmem %s2066_s27, 128 }
  0x9d   : > { %p1592_p13 = scmp.ne.s32.totalorder %s2066_s27, %s1591_s28  ;;  %p2713_p4 = scmp.ne.s32.totalorder %s2709_s26, 0 }
  0x9e   : > { %p1599_p12 = scmp.lt.s32.totalorder %s2066_s27, %s2066_s27  ;;  %p1600_p5 = scmp.lt.s32.totalorder %s1591_s28, %s1591_s28 }
  0x9f   : > { %p1593_p9 = pneg %p2713_p4 }
  0xa0   : > { %p1601_p7 = por %p1600_p5, %p1599_p12 }
  0xa1   : > { %p1594_p0 = pnand %p1593_p9, %p1592_p13 }
  0xa2   : > { %s2113_s12 = scalar_lea.hbm %s2712_s3, %s1912_s19 }
  0xa3   : > { %p1595_p10 = pneg %p1594_p0 }
  0xa5   : > { %p1602_p3 = pnand %p1601_p7, %p1595_p10 }
  0xa7   : > { %1605 = shalt.err (!%p1602_p3)
}
  0xa8   : > { %s1810_s25 = smov [#allocation2]   ;;  %s370_s22 = scalar_lea.vmem [#allocation9], %s1909_s18 }
  0xa9   : > { %1408 = dma.vmem_to_smem (!%p2713_p4), %s2066_s27, 128, %s1810_s25, [#allocation5]  }
  0xaa   : > { %s378_s14 = sshll.u32 %s370_s22, 4  ;;  %s2131_s6 = scalar_lea.hbm %s2661_s5, %s1912_s19  ;;  %s2125_s14 = int_to_ptr.vmem [resolvable:$true] %s378_s14 }
  0xab   : > { %s1606_s11 = scalar_lea.hbm %s2113_s12, 2048  ;;  %s1611_s1 = scalar_lea.hbm %s2712_s3, 4096 }
  0xac   : > { %p1607_p11 = scmp.ne.s32.totalorder %s2113_s12, %s1606_s11  ;;  %p1612_p13 = scmp.lt.s32.totalorder %s2113_s12, %s2712_s3 }
  0xad   : > { %p1613_p4 = scmp.lt.s32.totalorder %s1611_s1, %s1606_s11 }
  0xae   : > { %p1609_p1 = pnand %p1607_p11, %p1935_p8 }
  0xaf   : > { %p1614_p9 = por %p1613_p4, %p1612_p13 }
  0xb0   : > { %p1610_p2 = pneg %p1609_p1 }
  0xb2   : > { %p1615_p0 = pnand %p1614_p9, %p1610_p2 }
  0xb4   : > { %1618 = shalt.err (!%p1615_p0)
}
  0xb5   : > { %s1619_s25 = scalar_lea.vmem %s2125_s14, 2048  ;;  %s1811_s22 = smov [#allocation9]  }
  0xb6   : > { %p1620_p10 = scmp.ne.s32.totalorder %s2125_s14, %s1619_s25  ;;  %s1624_s13 = sshll.u32 %s1811_s22, 4  ;;  %s1625_s13 = int_to_ptr.vmem [resolvable:$false] %s1624_s13 }
  0xb7   : > { %s1626_s9 = scalar_lea.vmem %s1625_s13, 4096  ;;  %p1627_p7 = scmp.lt.s32.totalorder %s2125_s14, %s1625_s13 }
  0xb8   : > { %p1622_p12 = pnand %p1620_p10, %p1935_p8  ;;  %p1628_p3 = scmp.lt.s32.totalorder %s1626_s9, %s1619_s25 }
  0xba   : > { %p1623_p5 = pneg %p1622_p12  ;;  %p1629_p11 = por %p1628_p3, %p1627_p7 }
  0xbc   : > { %p1630_p1 = pnand %p1629_p11, %p1623_p5 }
  0xbe   : > { %1633 = shalt.err (!%p1630_p1)
}
  0xbf   : > { %s2714_s1 = scalar_lea.sflag [#allocation8], %s1919_s21  ;;  %s414_s23 = scalar_lea.vmem [#allocation12], %s1909_s18 }
  0xc0   : > { %1418 = dma.hbm_to_vmem [thread:$0]  (!%p1914_p6), %s2113_s12, 2048, %s2125_s14, %s2714_s1, %s2711_s4, %s2711_s4, %s2710_s0  }
  0xc1   : > { %s422_s11 = sshll.u32 %s414_s23, 4  ;;  %s2165_s27 = scalar_lea.hbm %s2663_s7, %s1912_s19  ;;  %s2159_s11 = int_to_ptr.vmem [resolvable:$true] %s422_s11 }
  0xc2   : > { %s1634_s25 = scalar_lea.hbm %s2131_s6, 2048  ;;  %s1639_s9 = scalar_lea.hbm %s2661_s5, 4096 }
  0xc3   : > { %p1635_p2 = scmp.ne.s32.totalorder %s2131_s6, %s1634_s25  ;;  %p1640_p9 = scmp.lt.s32.totalorder %s2131_s6, %s2661_s5 }
  0xc4   : > { %p1641_p0 = scmp.lt.s32.totalorder %s1639_s9, %s1634_s25 }
  0xc5   : > { %p1637_p13 = pnand %p1635_p2, %p1935_p8 }
  0xc6   : > { %p1642_p10 = por %p1641_p0, %p1640_p9 }
  0xc7   : > { %p1638_p4 = pneg %p1637_p13 }
  0xc9   : > { %p1643_p12 = pnand %p1642_p10, %p1638_p4 }
  0xcb   : > { %1646 = shalt.err (!%p1643_p12)
}
  0xcc   : > { %s1647_s14 = scalar_lea.vmem %s2159_s11, 2048  ;;  %s1812_s1 = smov [#allocation12]  }
  0xcd   : > { %p1648_p5 = scmp.ne.s32.totalorder %s2159_s11, %s1647_s14  ;;  %s1652_s23 = sshll.u32 %s1812_s1, 4  ;;  %s1653_s23 = int_to_ptr.vmem [resolvable:$false] %s1652_s23 }
  0xce   : > { %s1654_s26 = scalar_lea.vmem %s1653_s23, 4096  ;;  %p1655_p11 = scmp.lt.s32.totalorder %s2159_s11, %s1653_s23 }
  0xcf   : > { %p1650_p7 = pnand %p1648_p5, %p1935_p8  ;;  %p1656_p1 = scmp.lt.s32.totalorder %s1654_s26, %s1647_s14 }
  0xd1   : > { %p1651_p3 = pneg %p1650_p7  ;;  %p1657_p2 = por %p1656_p1, %p1655_p11 }
  0xd3   : > { %p1658_p13 = pnand %p1657_p2, %p1651_p3 }
  0xd5   : > { %1661 = shalt.err (!%p1658_p13)
}
  0xd6   : > { %s2715_s3 = scalar_lea.sflag [#allocation11], %s1919_s21  ;;  %s458_s28 = scalar_lea.vmem [#allocation15], %s1909_s18 }
  0xd7   : > { %1424 = dma.hbm_to_vmem [thread:$0]  (!%p1914_p6), %s2131_s6, 2048, %s2159_s11, %s2715_s3, %s2711_s4, %s2711_s4, %s2710_s0  }
  0xd8   : > { %s466_s25 = sshll.u32 %s458_s28, 4  ;;  %s1662_s22 = scalar_lea.hbm %s2165_s27, 2048  ;;  %s467_s25 = int_to_ptr.vmem [resolvable:$true] %s466_s25 }
  0xd9   : > { %p1663_p4 = scmp.ne.s32.totalorder %s2165_s27, %s1662_s22  ;;  %s1667_s12 = scalar_lea.hbm %s2663_s7, 4096 }
  0xda   : > { %p1668_p10 = scmp.lt.s32.totalorder %s2165_s27, %s2663_s7  ;;  %p1669_p12 = scmp.lt.s32.totalorder %s1667_s12, %s1662_s22 }
  0xdb   : > { %p1665_p9 = pnand %p1663_p4, %p1935_p8 }
  0xdc   : > { %p1670_p5 = por %p1669_p12, %p1668_p10 }
  0xdd   : > { %p1666_p0 = pneg %p1665_p9 }
  0xdf   : > { %p1671_p7 = pnand %p1670_p5, %p1666_p0 }
  0xe1   : > { %1674 = shalt.err (!%p1671_p7)
}
  0xe2   : > { %s1675_s6 = scalar_lea.vmem %s467_s25, 2048  ;;  %s1813_s11 = smov [#allocation15]  }
  0xe3   : > { %p1676_p3 = scmp.ne.s32.totalorder %s467_s25, %s1675_s6  ;;  %s1680_s23 = sshll.u32 %s1813_s11, 4  ;;  %s1681_s23 = int_to_ptr.vmem [resolvable:$false] %s1680_s23 }
  0xe4   : > { %s1682_s26 = scalar_lea.vmem %s1681_s23, 4096  ;;  %p1683_p2 = scmp.lt.s32.totalorder %s467_s25, %s1681_s23 }
  0xe5   : > { %p1678_p11 = pnand %p1676_p3, %p1935_p8  ;;  %p1684_p13 = scmp.lt.s32.totalorder %s1682_s26, %s1675_s6 }
  0xe7   : > { %p1679_p1 = pneg %p1678_p11  ;;  %p1685_p4 = por %p1684_p13, %p1683_p2 }
  0xe9   : > { %p1686_p9 = pnand %p1685_p4, %p1679_p1 }
  0xeb   : > { %1689 = shalt.err (!%p1686_p9)
}
  0xec   : > { %s2716_s3 = scalar_lea.sflag [#allocation14], %s1919_s21  ;;  %s2218_s13 = scalar_lea.hbm %s2664_s8, %s1912_s19 }
  0xed   : > { %1430 = dma.hbm_to_vmem [thread:$0]  (!%p1914_p6), %s2165_s27, 2048, %s467_s25, %s2716_s3, %s2711_s4, %s2711_s4, %s2710_s0  }
  0xee   : > { %s480_s9 = scalar_lea.vmem [#allocation16], %s1909_s18  ;;  %s477_s14 = scalar_lea.sflag [#allocation17], %s1906_s17 }
  0xef   : > { %s488_s12 = sshll.u32 %s480_s9, 4  ;;  %s1690_s21 = scalar_lea.hbm %s2218_s13, 2048  ;;  %s2221_s12 = int_to_ptr.vmem [resolvable:$true] %s488_s12 }
  0xf0   : > { %p1691_p0 = scmp.ne.s32.totalorder %s2218_s13, %s1690_s21  ;;  %s1695_s25 = scalar_lea.hbm %s2664_s8, 4096 }
  0xf1   : > { %p1696_p5 = scmp.lt.s32.totalorder %s2218_s13, %s2664_s8  ;;  %p1697_p7 = scmp.lt.s32.totalorder %s1695_s25, %s1690_s21 }
  0xf2   : > { %p1693_p10 = pnand %p1691_p0, %p1935_p8 }
  0xf3   : > { %p1698_p3 = por %p1697_p7, %p1696_p5 }
  0xf4   : > { %p1694_p12 = pneg %p1693_p10 }
  0xf6   : > { %p1699_p11 = pnand %p1698_p3, %p1694_p12 }
  0xf8   : > { %1702 = shalt.err (!%p1699_p11)
}
  0xf9   : > { %s1703_s17 = scalar_lea.vmem %s2221_s12, 2048  ;;  %s1814_s18 = smov [#allocation16]  }
  0xfa   : > { %p1704_p1 = scmp.ne.s32.totalorder %s2221_s12, %s1703_s17  ;;  %s1708_s11 = sshll.u32 %s1814_s18, 4  ;;  %s1709_s11 = int_to_ptr.vmem [resolvable:$false] %s1708_s11 }
  0xfb   : > { %s1710_s23 = scalar_lea.vmem %s1709_s11, 4096  ;;  %p1711_p4 = scmp.lt.s32.totalorder %s2221_s12, %s1709_s11 }
  0xfc   : > { %p1706_p2 = pnand %p1704_p1, %p1935_p8  ;;  %p1712_p9 = scmp.lt.s32.totalorder %s1710_s23, %s1703_s17 }
  0xfe   : > { %p1707_p13 = pneg %p1706_p2  ;;  %p1713_p0 = por %p1712_p9, %p1711_p4 }
 0x100   : > { %p1714_p10 = pnand %p1713_p0, %p1707_p13 }
 0x102   : > { %1717 = shalt.err (!%p1714_p10)
}
 0x103   : > { %1433 = dma.hbm_to_vmem [thread:$0]  (!%p1914_p6), %s2218_s13, 2048, %s2221_s12, %s477_s14, %s2711_s4, %s2711_s4, %s2710_s0  }
 0x104   : > { %p2717_p8 = scmp.ne.s32.totalorder %s2707_s24, 0 }
 0x105   : > { %p2718_p12 = scmp.eq.s32.totalorder (!%p2717_p8), %s2033_s2, 0 }
 0x106   : > { %500 = sbr.rel (%p2717_p8) target bundleno = 377 (0x179), region = 56 }
 0x10b   : > { %1761 = dma.done.wait (%p2718_p12), [#allocation5], 128   ;;  %p2719_p5 = pmov %p2718_p12 }
 0x10c   : > { %s2254_s29 = sand.u32 1, %s1794_s10   ;;  %p2720_p6 = scmp.ne.s32.totalorder %s2701_s15, 0 }
 0x10d   : > { %1763 = vsyncadd (%p2719_p5), [#allocation5], 4294967168  ;;  %s2257_s20 = sshll.u32 %s2254_s29, 7  ;;  %s507_s26 = scalar_lea.sflag [#allocation3], %s2254_s29 }
 0x10e   : > { %s2261_s0 = scalar_lea.vmem [#allocation6], %s2257_s20 }
 0x10f   : > { %1765 = dma.done.wait (%p2720_p6), %s507_s26, 2048  }
 0x110   : > { %1767 = vsyncadd (%p2720_p6), %s507_s26, 4294965248  ;;  %s515_s24 = sand.u32 1, %s2033_s2   ;;  %s2269_s3 = scalar_lea.vmem [#allocation7], %s2257_s20 }
 0x111   : > { %s516_s4 = scalar_lea.sflag [#allocation8], %s515_s24 }
 0x112   : > { %1769 = dma.done.wait (%p2720_p6), %s516_s4, 4096  }
 0x113   : > { %1771 = vsyncadd (%p2720_p6), %s516_s4, 4294963200  ;;  %s2276_s28 = scalar_lea.vmem [#allocation9], %s2257_s20  ;;  %s534_s22 = scalar_lea.sflag [#allocation11], %s515_s24 }
 0x114   : > { %s2279_s13 = scalar_lea.vmem [#allocation10], %s2257_s20 }
 0x115   : > { %1773 = dma.done.wait (%p2720_p6), %s534_s22, 4096  }
 0x116   : > { %1775 = vsyncadd (%p2720_p6), %s534_s22, 4294963200  ;;  %s2286_s9 = scalar_lea.vmem [#allocation12], %s2257_s20  ;;  %s552_s12 = scalar_lea.sflag [#allocation14], %s515_s24 }
 0x117   : > { %s2289_s14 = scalar_lea.vmem [#allocation13], %s2257_s20 }
 0x118   : > { %1777 = dma.done.wait (%p2720_p6), %s552_s12, 4096  }
 0x119   : > { %1779 = vsyncadd (%p2720_p6), %s552_s12, 4294963200  ;;  %s2296_s21 = scalar_lea.vmem [#allocation15], %s2257_s20  ;;  %s570_s1 = scalar_lea.sflag [#allocation17], %s2254_s29 }
 0x11a   : > { %s2300_s27 = scalar_lea.vmem [#allocation16], %s2257_s20 }
 0x11b   : > { %1781 = dma.done.wait (%p2720_p6), %s570_s1, 2048  }
 0x11c   : > { %1783 = vsyncadd (%p2720_p6), %s570_s1, 4294965248 }
 0x11d   : > { %578 = sfence }
 0x11e   : > { %s653_s25 = sld [smem:[#allocation2]]  ;;  %v654_v0 = vld [vmem:[%s2261_s0] sm:$0xff]  ;;  %v655_v1 = vld [vmem:[%s2261_s0 + $0x8] sm:$0xff]  ;;  %v656_v7 = vld [vmem:[%s2261_s0 + $0x10] sm:$0xff]  ;;  %s2408_s26 = scalar_lea.vmem [#allocation18], %s2257_s20 }
 0x11f   : > { %s1352_s6 = sld [smem:[#allocation2 + $0x80]]  ;;  %v688_v2 = vld [vmem:[%s2269_s3] sm:$0xff]  ;;  %v689_v3 = vld [vmem:[%s2269_s3 + $0x8] sm:$0xff]  ;;  %v690_v17 = vld [vmem:[%s2269_s3 + $0x10] sm:$0xff]  ;;  %s1382_s20 = sshll.u32 %s2033_s2, 11 }
 0x120   : > { %s1353_s19 = sld [smem:[#allocation2 + $0x100]]  ;;  %v738_v5 = vld [vmem:[%s2276_s28] sm:$0xff]  ;;  %v739_v6 = vld [vmem:[%s2276_s28 + $0x8] sm:$0xff]  ;;  %v740_v27 = vld [vmem:[%s2276_s28 + $0x10] sm:$0xff]  ;;  %s1054_s22 = scalar_lea.sflag [#allocation4], %s2254_s29 }
 0x121   : > { %s1354_s17 = sld [smem:[#allocation2 + $0x180]]  ;;  %v788_v10 = vld [vmem:[%s2279_s13] sm:$0xff]  ;;  %v789_v16 = vld [vmem:[%s2279_s13 + $0x8] sm:$0xff]  ;;  %v790_v40 = vld [vmem:[%s2279_s13 + $0x10] sm:$0xff]  ;;  %p2722_p3 = scmp.ne.s32.totalorder %s2703_s16, 0 }
 0x122   : > { %s1355_s18 = sld [smem:[#allocation2 + $0x200]]  ;;  %v838_v14 = vld [vmem:[%s2286_s9] sm:$0xff]  ;;  %v839_v21 = vld [vmem:[%s2286_s9 + $0x8] sm:$0xff]  ;;  %v840_v44 = vld [vmem:[%s2286_s9 + $0x10] sm:$0xff]  ;;  %s1815_s2 = smov [#allocation18]  }
 0x123   : > { %s2309_s15 = sld [smem:[#allocation2 + $0x280]]  ;;  %v888_v29 = vld [vmem:[%s2289_s14] sm:$0xff]  ;;  %v889_v32 = vld [vmem:[%s2289_s14 + $0x8] sm:$0xff]  ;;  %v657_v49 = vld [vmem:[%s2261_s0 + $0x18] sm:$0xff] }
 0x124   : > { %v2312_v4 = vstv %s653_s25  ;;  %s2315_s11 = sld [smem:[#allocation2 + $0x300]]  ;;  %v938_v35 = vld [vmem:[%s2296_s21] sm:$0xff]  ;;  %v939_v39 = vld [vmem:[%s2296_s21 + $0x8] sm:$0xff]  ;;  %v691_v50 = vld [vmem:[%s2269_s3 + $0x18] sm:$0xff] }
 0x125   : > { %v671_v8 = vmul.f32 %v2312_v4, %v654_v0  ;;  %v2320_v9 = vstv %s1352_s6  ;;  %s2323_s23 = sld [smem:[#allocation2 + $0x380]]  ;;  %v672_v11 = vmul.f32 %v2312_v4, %v655_v1  ;;  %v673_v22 = vmul.f32 %v2312_v4, %v656_v7  ;;  %v988_v41 = vld [vmem:[%s2300_s27] sm:$0xff]  ;;  %v741_v51 = vld [vmem:[%s2276_s28 + $0x18] sm:$0xff]  ;;  %v989_v54 = vld [vmem:[%s2300_s27 + $0x8] sm:$0xff] }
 0x126   : > { %v705_v12 = vmul.f32 %v2320_v9, %v688_v2  ;;  %v2327_v13 = vstv %s1353_s19  ;;  %v706_v15 = vmul.f32 %v2320_v9, %v689_v3  ;;  %v707_v33 = vmul.f32 %v2320_v9, %v690_v17  ;;  %v890_v57 = vld [vmem:[%s2289_s14 + $0x10] sm:$0xff]  ;;  %v791_v63 = vld [vmem:[%s2279_s13 + $0x18] sm:$0xff] }
 0x127   : > { %v755_v18 = vmul.f32 %v2327_v13, %v738_v5  ;;  %v2334_v19 = vstv %s1354_s17  ;;  %v756_v20 = vmul.f32 %v2327_v13, %v739_v6  ;;  %v757_v43 = vmul.f32 %v2327_v13, %v740_v27  ;;  %v940_v62 = vld [vmem:[%s2296_s21 + $0x10] sm:$0xff]  ;;  %v841_v5 = vld [vmem:[%s2286_s9 + $0x18] sm:$0xff]  ;;  %v658_v6 = vld [vmem:[%s2261_s0 + $0x20] sm:$0xff] }
 0x128   : > { %v721_v23 = vadd.f32 %v705_v12, %v671_v8  ;;  %v805_v24 = vmul.f32 %v2334_v19, %v788_v10  ;;  %v2340_v25 = vstv %s1355_s18  ;;  %v722_v26 = vadd.f32 %v706_v15, %v672_v11  ;;  %v692_v12 = vld [vmem:[%s2269_s3 + $0x20] sm:$0xff]  ;;  %v990_v17 = vld [vmem:[%s2300_s27 + $0x10] sm:$0xff] }
 0x129   : > { %v855_v28 = vmul.f32 %v2340_v25, %v838_v14  ;;  %v2346_v30 = vstv %s2309_s15  ;;  %v806_v31 = vmul.f32 %v2334_v19, %v789_v16  ;;  %v856_v38 = vmul.f32 %v2340_v25, %v839_v21  ;;  %v742_v14 = vld [vmem:[%s2276_s28 + $0x20] sm:$0xff]  ;;  %v891_v21 = vld [vmem:[%s2289_s14 + $0x18] sm:$0xff] }
 0x12a   : > { %v771_v34 = vadd.f32 %v755_v18, %v721_v23  ;;  %v2353_v36 = vstv %s2315_s11  ;;  %v772_v37 = vadd.f32 %v756_v20, %v722_v26  ;;  %v905_v46 = vmul.f32 %v2346_v30, %v888_v29  ;;  %v941_v26 = vld [vmem:[%s2296_s21 + $0x18] sm:$0xff] }
 0x12b   : > { %v2360_v42 = vstv %s2323_s23  ;;  %v906_v48 = vmul.f32 %v2346_v30, %v889_v32  ;;  %v955_v52 = vmul.f32 %v2353_v36, %v938_v35  ;;  %v956_v53 = vmul.f32 %v2353_v36, %v939_v39  ;;  %v659_v35 = vld [vmem:[%s2261_s0 + $0x28] sm:$0xff] }
 0x12c   : > { %v821_v45 = vadd.f32 %v805_v24, %v771_v34  ;;  %v822_v47 = vadd.f32 %v806_v31, %v772_v37  ;;  %v723_v55 = vadd.f32 %v707_v33, %v673_v22  ;;  %v807_v56 = vmul.f32 %v2334_v19, %v790_v40  ;;  %v842_v34 = vld [vmem:[%s2286_s9 + $0x20] sm:$0xff]  ;;  %v693_v37 = vld [vmem:[%s2269_s3 + $0x28] sm:$0xff] }
 0x12d   : > { %v1005_v59 = vmul.f32 %v2360_v42, %v988_v41  ;;  %v857_v61 = vmul.f32 %v2340_v25, %v840_v44  ;;  %v674_v1 = vmul.f32 %v2312_v4, %v657_v49  ;;  %v708_v2 = vmul.f32 %v2320_v9, %v691_v50  ;;  %v892_v49 = vld [vmem:[%s2289_s14 + $0x20] sm:$0xff]  ;;  %v793_v50 = vld [vmem:[%s2279_s13 + $0x28] sm:$0xff] }
 0x12e   : > { %v871_v58 = vadd.f32 %v855_v28, %v821_v45  ;;  %v872_v60 = vadd.f32 %v856_v38, %v822_v47  ;;  %v773_v0 = vadd.f32 %v757_v43, %v723_v55  ;;  %v758_v3 = vmul.f32 %v2327_v13, %v741_v51  ;;  %v792_v28 = vld [vmem:[%s2279_s13 + $0x20] sm:$0xff]  ;;  %v743_v43 = vld [vmem:[%s2276_s28 + $0x28] sm:$0xff] }
 0x12f   : > { %v1006_v10 = vmul.f32 %v2360_v42, %v989_v54  ;;  %v907_v11 = vmul.f32 %v2346_v30, %v890_v57  ;;  %v957_v16 = vmul.f32 %v2353_v36, %v940_v62  ;;  %v724_v18 = vadd.f32 %v708_v2, %v674_v1  ;;  %v694_v62 = vld [vmem:[%s2269_s3 + $0x30] sm:$0xff]  ;;  %v992_v1 = vld [vmem:[%s2300_s27 + $0x20] sm:$0xff] }
 0x130   : > { %v921_v7 = vadd.f32 %v905_v46, %v871_v58  ;;  %v922_v8 = vadd.f32 %v906_v48, %v872_v60  ;;  %v823_v15 = vadd.f32 %v807_v56, %v773_v0  ;;  %v808_v20 = vmul.f32 %v2334_v19, %v791_v63  ;;  %v991_v46 = vld [vmem:[%s2300_s27 + $0x18] sm:$0xff]  ;;  %v843_v60 = vld [vmem:[%s2286_s9 + $0x28] sm:$0xff] }
 0x131   : > { %v858_v24 = vmul.f32 %v2340_v25, %v841_v5  ;;  %v675_v27 = vmul.f32 %v2312_v4, %v658_v6  ;;  %v774_v31 = vadd.f32 %v758_v3, %v724_v18  ;;  %v709_v32 = vmul.f32 %v2320_v9, %v692_v12  ;;  %v744_v5 = vld [vmem:[%s2276_s28 + $0x30] sm:$0xff] }
 0x132   : > { %v971_v22 = vadd.f32 %v955_v52, %v921_v7  ;;  %v972_v23 = vadd.f32 %v956_v53, %v922_v8  ;;  %v873_v29 = vadd.f32 %v857_v61, %v823_v15  ;;  %v759_v33 = vmul.f32 %v2327_v13, %v742_v14  ;;  %v942_v53 = vld [vmem:[%s2296_s21 + $0x20] sm:$0xff]  ;;  %v660_v61 = vld [vmem:[%s2261_s0 + $0x30] sm:$0xff] }
 0x133   : > { %v1007_v40 = vmul.f32 %v2360_v42, %v990_v17  ;;  %v908_v41 = vmul.f32 %v2346_v30, %v891_v21  ;;  %v824_v45 = vadd.f32 %v808_v20, %v774_v31  ;;  %v725_v47 = vadd.f32 %v709_v32, %v675_v27  ;;  %v794_v12 = vld [vmem:[%s2279_s13 + $0x30] sm:$0xff]  ;;  %v695_v27 = vld [vmem:[%s2269_s3 + $0x38] sm:$0xff]  ;;  %v993_v31 = vld [vmem:[%s2300_s27 + $0x28] sm:$0xff] }
 0x134   : > { %v1021_v38 = vadd.f32 %v1005_v59, %v971_v22  ;;  %v1022_v39 = vadd.f32 %v1006_v10, %v972_v23  ;;  %v923_v44 = vadd.f32 %v907_v11, %v873_v29  ;;  %v809_v48 = vmul.f32 %v2334_v19, %v792_v28  ;;  %v893_v11 = vld [vmem:[%s2289_s14 + $0x28] sm:$0xff]  ;;  %v844_v20 = vld [vmem:[%s2286_s9 + $0x30] sm:$0xff] }
 0x135   : > { %v958_v51 = vmul.f32 %v2353_v36, %v941_v26  ;;  %v859_v52 = vmul.f32 %v2340_v25, %v842_v34  ;;  %v676_v54 = vmul.f32 %v2312_v4, %v659_v35  ;;  %v710_v55 = vmul.f32 %v2320_v9, %v693_v37  ;;  %v661_v26 = vld [vmem:[%s2261_s0 + $0x38] sm:$0xff]  ;;  %v894_v34 = vld [vmem:[%s2289_s14 + $0x30] sm:$0xff] }
 0x136   : > { %1037 = vst [vmem:[%s2408_s26] sm:$0xff] %v1021_v38  ;;  %1038 = vst [vmem:[%s2408_s26 + $0x8] sm:$0xff] %v1022_v39  ;;  %v973_v56 = vadd.f32 %v957_v16, %v923_v44  ;;  %v874_v57 = vadd.f32 %v858_v24, %v824_v45  ;;  %v775_v58 = vadd.f32 %v759_v33, %v725_v47  ;;  %v943_v16 = vld [vmem:[%s2296_s21 + $0x28] sm:$0xff]  ;;  %v745_v35 = vld [vmem:[%s2276_s28 + $0x38] sm:$0xff] }
 0x137   : > { %v760_v59 = vmul.f32 %v2327_v13, %v743_v43  ;;  %v1008_v63 = vmul.f32 %v2360_v42, %v991_v46  ;;  %v909_v0 = vmul.f32 %v2346_v30, %v892_v49  ;;  %v726_v2 = vadd.f32 %v710_v55, %v676_v54  ;;  %v944_v45 = vld [vmem:[%s2296_s21 + $0x30] sm:$0xff]  ;;  %v662_v49 = vld [vmem:[%s2261_s0 + $0x40] sm:$0xff] }
 0x138   : > { %v810_v3 = vmul.f32 %v2334_v19, %v793_v50  ;;  %v1023_v6 = vadd.f32 %v1007_v40, %v973_v56  ;;  %v924_v7 = vadd.f32 %v908_v41, %v874_v57  ;;  %v825_v8 = vadd.f32 %v809_v48, %v775_v58  ;;  %v795_v41 = vld [vmem:[%s2279_s13 + $0x38] sm:$0xff]  ;;  %v696_v55 = vld [vmem:[%s2269_s3 + $0x40] sm:$0xff] }
 0x139   : > { %v959_v10 = vmul.f32 %v2353_v36, %v942_v53  ;;  %v776_v14 = vadd.f32 %v760_v59, %v726_v2  ;;  %v860_v15 = vmul.f32 %v2340_v25, %v843_v60  ;;  %v677_v17 = vmul.f32 %v2312_v4, %v660_v61  ;;  %v845_v48 = vld [vmem:[%s2286_s9 + $0x38] sm:$0xff]  ;;  %v994_v53 = vld [vmem:[%s2300_s27 + $0x30] sm:$0xff]  ;;  %v746_v61 = vld [vmem:[%s2276_s28 + $0x40] sm:$0xff] }
 0x13a   : > { %v711_v18 = vmul.f32 %v2320_v9, %v694_v62  ;;  %1039 = vst [vmem:[%s2408_s26 + $0x10] sm:$0xff] %v1023_v6  ;;  %v974_v21 = vadd.f32 %v958_v51, %v924_v7  ;;  %v875_v22 = vadd.f32 %v859_v52, %v825_v8  ;;  %v1009_v23 = vmul.f32 %v2360_v42, %v992_v1  ;;  %v895_v60 = vld [vmem:[%s2289_s14 + $0x38] sm:$0xff]  ;;  %v796_v62 = vld [vmem:[%s2279_s13 + $0x40] sm:$0xff] }
 0x13b   : > { %v761_v24 = vmul.f32 %v2327_v13, %v744_v5  ;;  %v826_v28 = vadd.f32 %v810_v3, %v776_v14  ;;  %v910_v29 = vmul.f32 %v2346_v30, %v893_v11  ;;  %v811_v33 = vmul.f32 %v2334_v19, %v794_v12  ;;  %v945_v2 = vld [vmem:[%s2296_s21 + $0x38] sm:$0xff]  ;;  %v663_v11 = vld [vmem:[%s2261_s0 + $0x48] sm:$0xff] }
 0x13c   : > { %v727_v32 = vadd.f32 %v711_v18, %v677_v17  ;;  %v1024_v37 = vadd.f32 %v1008_v63, %v974_v21  ;;  %v925_v38 = vadd.f32 %v909_v0, %v875_v22  ;;  %v960_v39 = vmul.f32 %v2353_v36, %v943_v16  ;;  %v697_v12 = vld [vmem:[%s2269_s3 + $0x48] sm:$0xff] }
 0x13d   : > { %v861_v40 = vmul.f32 %v2340_v25, %v844_v20  ;;  %v876_v43 = vadd.f32 %v860_v15, %v826_v28  ;;  %v678_v46 = vmul.f32 %v2312_v4, %v661_v26  ;;  %v712_v47 = vmul.f32 %v2320_v9, %v695_v27  ;;  %v747_v18 = vld [vmem:[%s2276_s28 + $0x48] sm:$0xff]  ;;  %v896_v26 = vld [vmem:[%s2289_s14 + $0x40] sm:$0xff] }
 0x13e   : > { %v777_v44 = vadd.f32 %v761_v24, %v727_v32  ;;  %1040 = vst [vmem:[%s2408_s26 + $0x18] sm:$0xff] %v1024_v37  ;;  %v975_v50 = vadd.f32 %v959_v10, %v925_v38  ;;  %v1010_v51 = vmul.f32 %v2360_v42, %v993_v31  ;;  %v911_v52 = vmul.f32 %v2346_v30, %v894_v34  ;;  %v846_v10 = vld [vmem:[%s2286_s9 + $0x40] sm:$0xff]  ;;  %v797_v27 = vld [vmem:[%s2279_s13 + $0x48] sm:$0xff] }
 0x13f   : > { %v762_v54 = vmul.f32 %v2327_v13, %v745_v35  ;;  %v926_v56 = vadd.f32 %v910_v29, %v876_v43  ;;  %v728_v58 = vadd.f32 %v712_v47, %v678_v46  ;;  %v812_v59 = vmul.f32 %v2334_v19, %v795_v41  ;;  %v946_v31 = vld [vmem:[%s2296_s21 + $0x40] sm:$0xff]  ;;  %v698_v41 = vld [vmem:[%s2269_s3 + $0x50] sm:$0xff] }
 0x140   : > { %v827_v57 = vadd.f32 %v811_v33, %v777_v44  ;;  %v1025_v63 = vadd.f32 %v1009_v23, %v975_v50  ;;  %v961_v0 = vmul.f32 %v2353_v36, %v944_v45  ;;  %v862_v1 = vmul.f32 %v2340_v25, %v845_v48  ;;  %v995_v23 = vld [vmem:[%s2300_s27 + $0x38] sm:$0xff]  ;;  %v996_v45 = vld [vmem:[%s2300_s27 + $0x40] sm:$0xff]  ;;  %v748_v48 = vld [vmem:[%s2276_s28 + $0x50] sm:$0xff] }
 0x141   : > { %v679_v3 = vmul.f32 %v2312_v4, %v662_v49  ;;  %v976_v5 = vadd.f32 %v960_v39, %v926_v56  ;;  %v778_v7 = vadd.f32 %v762_v54, %v728_v58  ;;  %v713_v8 = vmul.f32 %v2320_v9, %v696_v55  ;;  %v847_v39 = vld [vmem:[%s2286_s9 + $0x48] sm:$0xff]  ;;  %v798_v54 = vld [vmem:[%s2279_s13 + $0x50] sm:$0xff] }
 0x142   : > { %v877_v6 = vadd.f32 %v861_v40, %v827_v57  ;;  %1041 = vst [vmem:[%s2408_s26 + $0x20] sm:$0xff] %v1025_v63  ;;  %v1011_v14 = vmul.f32 %v2360_v42, %v994_v53  ;;  %v912_v15 = vmul.f32 %v2346_v30, %v895_v60  ;;  %v763_v16 = vmul.f32 %v2327_v13, %v746_v61  ;;  %v664_v40 = vld [vmem:[%s2261_s0 + $0x50] sm:$0xff]  ;;  %v897_v53 = vld [vmem:[%s2289_s14 + $0x48] sm:$0xff] }
 0x143   : > { %v813_v17 = vmul.f32 %v2334_v19, %v796_v62  ;;  %v1026_v20 = vadd.f32 %v1010_v51, %v976_v5  ;;  %v828_v22 = vadd.f32 %v812_v59, %v778_v7  ;;  %v729_v24 = vadd.f32 %v713_v8, %v679_v3  ;;  %v947_v57 = vld [vmem:[%s2296_s21 + $0x48] sm:$0xff]  ;;  %v848_v60 = vld [vmem:[%s2286_s9 + $0x50] sm:$0xff] }
 0x144   : > { %v927_v21 = vadd.f32 %v911_v52, %v877_v6  ;;  %v962_v28 = vmul.f32 %v2353_v36, %v945_v2  ;;  %v863_v29 = vmul.f32 %v2340_v25, %v846_v10  ;;  %v680_v32 = vmul.f32 %v2312_v4, %v663_v11  ;;  %v699_v2 = vld [vmem:[%s2269_s3 + $0x58] sm:$0xff]  ;;  %v997_v6 = vld [vmem:[%s2300_s27 + $0x48] sm:$0xff]  ;;  %v898_v10 = vld [vmem:[%s2289_s14 + $0x50] sm:$0xff] }
 0x145   : > { %v714_v33 = vmul.f32 %v2320_v9, %v697_v12  ;;  %1042 = vst [vmem:[%s2408_s26 + $0x28] sm:$0xff] %v1026_v20  ;;  %v878_v35 = vadd.f32 %v862_v1, %v828_v22  ;;  %v779_v37 = vadd.f32 %v763_v16, %v729_v24  ;;  %v764_v38 = vmul.f32 %v2327_v13, %v747_v18  ;;  %v665_v1 = vld [vmem:[%s2261_s0 + $0x58] sm:$0xff] }
 0x146   : > { %v977_v34 = vadd.f32 %v961_v0, %v927_v21  ;;  %v1012_v43 = vmul.f32 %v2360_v42, %v995_v23  ;;  %v913_v44 = vmul.f32 %v2346_v30, %v896_v26  ;;  %v814_v47 = vmul.f32 %v2334_v19, %v797_v27  ;;  %v749_v11 = vld [vmem:[%s2276_s28 + $0x58] sm:$0xff]  ;;  %v948_v21 = vld [vmem:[%s2296_s21 + $0x50] sm:$0xff]  ;;  %v666_v26 = vld [vmem:[%s2261_s0 + $0x60] sm:$0xff] }
 0x147   : > { %v730_v46 = vadd.f32 %v714_v33, %v680_v32  ;;  %v928_v50 = vadd.f32 %v912_v15, %v878_v35  ;;  %v829_v51 = vadd.f32 %v813_v17, %v779_v37  ;;  %v963_v52 = vmul.f32 %v2353_v36, %v946_v31  ;;  %v799_v17 = vld [vmem:[%s2279_s13 + $0x58] sm:$0xff]  ;;  %v998_v31 = vld [vmem:[%s2300_s27 + $0x50] sm:$0xff]  ;;  %v700_v33 = vld [vmem:[%s2269_s3 + $0x60] sm:$0xff] }
 0x148   : > { %v1027_v49 = vadd.f32 %v1011_v14, %v977_v34  ;;  %v864_v56 = vmul.f32 %v2340_v25, %v847_v39  ;;  %v681_v58 = vmul.f32 %v2312_v4, %v664_v40  ;;  %v715_v59 = vmul.f32 %v2320_v9, %v698_v41  ;;  %v849_v24 = vld [vmem:[%s2286_s9 + $0x58] sm:$0xff]  ;;  %v750_v40 = vld [vmem:[%s2276_s28 + $0x60] sm:$0xff] }
 0x149   : > { %v780_v55 = vadd.f32 %v764_v38, %v730_v46  ;;  %v978_v61 = vadd.f32 %v962_v28, %v928_v50  ;;  %v879_v62 = vadd.f32 %v863_v29, %v829_v51  ;;  %v1013_v63 = vmul.f32 %v2360_v42, %v996_v45  ;;  %v899_v39 = vld [vmem:[%s2289_s14 + $0x58] sm:$0xff]  ;;  %v800_v41 = vld [vmem:[%s2279_s13 + $0x60] sm:$0xff] }
 0x14a   : > { %1043 = vst [vmem:[%s2408_s26 + $0x30] sm:$0xff] %v1027_v49  ;;  %v765_v0 = vmul.f32 %v2327_v13, %v748_v48  ;;  %v914_v5 = vmul.f32 %v2346_v30, %v897_v53  ;;  %v731_v7 = vadd.f32 %v715_v59, %v681_v58  ;;  %v815_v8 = vmul.f32 %v2334_v19, %v798_v54  ;;  %v949_v46 = vld [vmem:[%s2296_s21 + $0x58] sm:$0xff]  ;;  %v667_v53 = vld [vmem:[%s2261_s0 + $0x68] sm:$0xff] }
 0x14b   : > { %v830_v3 = vadd.f32 %v814_v47, %v780_v55  ;;  %v1028_v12 = vadd.f32 %v1012_v43, %v978_v61  ;;  %v929_v14 = vadd.f32 %v913_v44, %v879_v62  ;;  %v964_v15 = vmul.f32 %v2353_v36, %v947_v57  ;;  %v701_v54 = vld [vmem:[%s2269_s3 + $0x68] sm:$0xff] }
 0x14c   : > { %v865_v16 = vmul.f32 %v2340_v25, %v848_v60  ;;  %v781_v20 = vadd.f32 %v765_v0, %v731_v7  ;;  %v682_v22 = vmul.f32 %v2312_v4, %v665_v1  ;;  %v716_v23 = vmul.f32 %v2320_v9, %v699_v2  ;;  %v751_v59 = vld [vmem:[%s2276_s28 + $0x68] sm:$0xff]  ;;  %v900_v1 = vld [vmem:[%s2289_s14 + $0x60] sm:$0xff] }
 0x14d   : > { %v880_v18 = vadd.f32 %v864_v56, %v830_v3  ;;  %1044 = vst [vmem:[%s2408_s26 + $0x38] sm:$0xff] %v1028_v12  ;;  %v979_v27 = vadd.f32 %v963_v52, %v929_v14  ;;  %v1014_v28 = vmul.f32 %v2360_v42, %v997_v6  ;;  %v915_v29 = vmul.f32 %v2346_v30, %v898_v10  ;;  %v850_v52 = vld [vmem:[%s2286_s9 + $0x60] sm:$0xff]  ;;  %v801_v2 = vld [vmem:[%s2279_s13 + $0x68] sm:$0xff] }
 0x14e   : > { %v766_v32 = vmul.f32 %v2327_v13, %v749_v11  ;;  %v831_v35 = vadd.f32 %v815_v8, %v781_v20  ;;  %v732_v37 = vadd.f32 %v716_v23, %v682_v22  ;;  %v816_v38 = vmul.f32 %v2334_v19, %v799_v17  ;;  %v950_v6 = vld [vmem:[%s2296_s21 + $0x60] sm:$0xff]  ;;  %v702_v17 = vld [vmem:[%s2269_s3 + $0x70] sm:$0xff] }
 0x14f   : > { %v930_v34 = vadd.f32 %v914_v5, %v880_v18  ;;  %v1029_v43 = vadd.f32 %v1013_v63, %v979_v27  ;;  %v965_v44 = vmul.f32 %v2353_v36, %v948_v21  ;;  %v866_v45 = vmul.f32 %v2340_v25, %v849_v24  ;;  %v999_v63 = vld [vmem:[%s2300_s27 + $0x58] sm:$0xff]  ;;  %v1000_v21 = vld [vmem:[%s2300_s27 + $0x60] sm:$0xff]  ;;  %v752_v24 = vld [vmem:[%s2276_s28 + $0x70] sm:$0xff] }
 0x150   : > { %v683_v47 = vmul.f32 %v2312_v4, %v666_v26  ;;  %v881_v49 = vadd.f32 %v865_v16, %v831_v35  ;;  %v782_v50 = vadd.f32 %v766_v32, %v732_v37  ;;  %v717_v51 = vmul.f32 %v2320_v9, %v700_v33  ;;  %v668_v16 = vld [vmem:[%s2261_s0 + $0x70] sm:$0xff]  ;;  %v951_v35 = vld [vmem:[%s2296_s21 + $0x68] sm:$0xff] }
 0x151   : > { %v980_v48 = vadd.f32 %v964_v15, %v930_v34  ;;  %1045 = vst [vmem:[%s2408_s26 + $0x40] sm:$0xff] %v1029_v43  ;;  %v1015_v55 = vmul.f32 %v2360_v42, %v998_v31  ;;  %v916_v56 = vmul.f32 %v2346_v30, %v899_v39  ;;  %v767_v57 = vmul.f32 %v2327_v13, %v750_v40  ;;  %v851_v15 = vld [vmem:[%s2286_s9 + $0x68] sm:$0xff]  ;;  %v802_v32 = vld [vmem:[%s2279_s13 + $0x70] sm:$0xff] }
 0x152   : > { %v817_v58 = vmul.f32 %v2334_v19, %v800_v41  ;;  %v931_v61 = vadd.f32 %v915_v29, %v881_v49  ;;  %v832_v62 = vadd.f32 %v816_v38, %v782_v50  ;;  %v733_v0 = vadd.f32 %v717_v51, %v683_v47  ;;  %v901_v31 = vld [vmem:[%s2289_s14 + $0x68] sm:$0xff]  ;;  %v852_v39 = vld [vmem:[%s2286_s9 + $0x70] sm:$0xff] }
 0x153   : > { %v1030_v60 = vadd.f32 %v1014_v28, %v980_v48  ;;  %v966_v3 = vmul.f32 %v2353_v36, %v949_v46  ;;  %v867_v5 = vmul.f32 %v2340_v25, %v850_v52  ;;  %v684_v7 = vmul.f32 %v2312_v4, %v667_v53  ;;  %v703_v46 = vld [vmem:[%s2269_s3 + $0x78] sm:$0xff]  ;;  %v1001_v49 = vld [vmem:[%s2300_s27 + $0x68] sm:$0xff]  ;;  %v902_v52 = vld [vmem:[%s2289_s14 + $0x70] sm:$0xff]  ;;  %s2721_s3 = sld [smem:[#allocation37_spill]] }
 0x154   : > { %v718_v8 = vmul.f32 %v2320_v9, %v701_v54  ;;  %v981_v10 = vadd.f32 %v965_v44, %v931_v61  ;;  %v882_v11 = vadd.f32 %v866_v45, %v832_v62  ;;  %v783_v12 = vadd.f32 %v767_v57, %v733_v0  ;;  %v669_v45 = vld [vmem:[%s2261_s0 + $0x78] sm:$0xff]  ;;  %v952_v61 = vld [vmem:[%s2296_s21 + $0x70] sm:$0xff]  ;;  %s1068_s0 = sshll.u32 %s2408_s26, 4  ;;  %s2612_s0 = int_to_ptr.vmem [resolvable:$true] %s1068_s0 }
 0x155   : > { %1046 = vst [vmem:[%s2408_s26 + $0x48] sm:$0xff] %v1030_v60  ;;  %v768_v14 = vmul.f32 %v2327_v13, %v751_v59  ;;  %v1016_v18 = vmul.f32 %v2360_v42, %v999_v63  ;;  %v917_v20 = vmul.f32 %v2346_v30, %v900_v1  ;;  %v818_v23 = vmul.f32 %v2334_v19, %v801_v2  ;;  %v753_v53 = vld [vmem:[%s2276_s28 + $0x78] sm:$0xff] }
 0x156   : > { %v734_v22 = vadd.f32 %v718_v8, %v684_v7  ;;  %v1031_v26 = vadd.f32 %v1015_v55, %v981_v10  ;;  %v932_v27 = vadd.f32 %v916_v56, %v882_v11  ;;  %v833_v28 = vadd.f32 %v817_v58, %v783_v12  ;;  %v803_v58 = vld [vmem:[%s2279_s13 + $0x78] sm:$0xff]  ;;  %v1002_v8 = vld [vmem:[%s2300_s27 + $0x70] sm:$0xff]  ;;  %s1718_s13 = scalar_lea.vmem %s2612_s0, 2048 }
 0x157   : > { %v967_v29 = vmul.f32 %v2353_v36, %v950_v6  ;;  %v868_v34 = vmul.f32 %v2340_v25, %v851_v15  ;;  %v685_v37 = vmul.f32 %v2312_v4, %v668_v16  ;;  %v719_v38 = vmul.f32 %v2320_v9, %v702_v17  ;;  %v903_v12 = vld [vmem:[%s2289_s14 + $0x78] sm:$0xff]  ;;  %p1719_p7 = scmp.ne.s32.totalorder %s2612_s0, %s1718_s13 }
 0x158   : > { %v784_v33 = vadd.f32 %v768_v14, %v734_v22  ;;  %1047 = vst [vmem:[%s2408_s26 + $0x50] sm:$0xff] %v1031_v26  ;;  %v982_v40 = vadd.f32 %v966_v3, %v932_v27  ;;  %v883_v41 = vadd.f32 %v867_v5, %v833_v28  ;;  %v1017_v43 = vmul.f32 %v2360_v42, %v1000_v21  ;;  %v853_v5 = vld [vmem:[%s2286_s9 + $0x78] sm:$0xff]  ;;  %s1722_s9 = sshll.u32 %s1815_s2, 4  ;;  %s1723_s9 = int_to_ptr.vmem [resolvable:$false] %s1722_s9 }
 0x159   : > { %v769_v44 = vmul.f32 %v2327_v13, %v752_v24  ;;  %v918_v48 = vmul.f32 %v2346_v30, %v901_v31  ;;  %v735_v50 = vadd.f32 %v719_v38, %v685_v37  ;;  %v819_v51 = vmul.f32 %v2334_v19, %v802_v32  ;;  %s2610_s28 = scalar_lea.hbm %s2721_s3, %s1382_s20  ;;  %p1720_p11 = pnand %p1719_p7, %p2722_p3 }
 0x15a   : > { %v834_v47 = vadd.f32 %v818_v23, %v784_v33  ;;  %v1032_v54 = vadd.f32 %v1016_v18, %v982_v40  ;;  %v933_v55 = vadd.f32 %v917_v20, %v883_v41  ;;  %v968_v56 = vmul.f32 %v2353_v36, %v951_v35  ;;  %v953_v18 = vld [vmem:[%s2296_s21 + $0x78] sm:$0xff]  ;;  %s1724_s12 = scalar_lea.vmem %s1723_s9, 4096  ;;  %p1725_p2 = scmp.lt.s32.totalorder %s2612_s0, %s1723_s9 }
 0x15b   : > { %v869_v57 = vmul.f32 %v2340_v25, %v852_v39  ;;  %v785_v60 = vadd.f32 %v769_v44, %v735_v50  ;;  %v686_v62 = vmul.f32 %v2312_v4, %v669_v45  ;;  %v720_v63 = vmul.f32 %v2320_v9, %v703_v46  ;;  %v1003_v23 = vld [vmem:[%s2300_s27 + $0x78] sm:$0xff]  ;;  %p1721_p1 = pneg %p1720_p11  ;;  %p1726_p13 = scmp.lt.s32.totalorder %s1724_s12, %s1718_s13 }
 0x15c   : > { %v884_v59 = vadd.f32 %v868_v34, %v834_v47  ;;  %1048 = vst [vmem:[%s2408_s26 + $0x58] sm:$0xff] %v1032_v54  ;;  %v983_v0 = vadd.f32 %v967_v29, %v933_v55  ;;  %v1018_v1 = vmul.f32 %v2360_v42, %v1001_v49  ;;  %v919_v2 = vmul.f32 %v2346_v30, %v902_v52 }
 0x15d   : > { %v770_v3 = vmul.f32 %v2327_v13, %v753_v53  ;;  %v835_v7 = vadd.f32 %v819_v51, %v785_v60  ;;  %v736_v10 = vadd.f32 %v720_v63, %v686_v62  ;;  %v820_v4 = vmul.f32 %v2334_v19, %v803_v58  ;;  %p1727_p4 = por %p1726_p13, %p1725_p2 }
 0x15e   : > { %v934_v6 = vadd.f32 %v918_v48, %v884_v59  ;;  %v1033_v9 = vadd.f32 %v1017_v43, %v983_v0  ;;  %v969_v11 = vmul.f32 %v2353_v36, %v952_v61  ;;  %v870_v17 = vmul.f32 %v2340_v25, %v853_v5 }
 0x15f   : > { %v885_v15 = vadd.f32 %v869_v57, %v835_v7  ;;  %v786_v16 = vadd.f32 %v770_v3, %v736_v10  ;;  %v1019_v13 = vmul.f32 %v2360_v42, %v1002_v8  ;;  %v920_v22 = vmul.f32 %v2346_v30, %v903_v12  ;;  %p1728_p9 = pnand %p1727_p4, %p1721_p1 }
 0x160   : > { %v984_v14 = vadd.f32 %v968_v56, %v934_v6  ;;  %1049 = vst [vmem:[%s2408_s26 + $0x60] sm:$0xff] %v1033_v9  ;;  %v970_v25 = vmul.f32 %v2353_v36, %v953_v18  ;;  %v1020_v29 = vmul.f32 %v2360_v42, %v1003_v23 }
 0x161   : > { %v935_v21 = vadd.f32 %v919_v2, %v885_v15  ;;  %v836_v19 = vadd.f32 %v820_v4, %v786_v16 }
 0x162   : > { %v1034_v20 = vadd.f32 %v1018_v1, %v984_v14 }
 0x163   : > { %v985_v24 = vadd.f32 %v969_v11, %v935_v21  ;;  %v886_v26 = vadd.f32 %v870_v17, %v836_v19 }
 0x164   : > { %1050 = vst [vmem:[%s2408_s26 + $0x68] sm:$0xff] %v1034_v20 }
 0x165   : > { %v1035_v27 = vadd.f32 %v1019_v13, %v985_v24  ;;  %v936_v28 = vadd.f32 %v920_v22, %v886_v26 }
 0x167   : > { %1051 = vst [vmem:[%s2408_s26 + $0x70] sm:$0xff] %v1035_v27  ;;  %v986_v31 = vadd.f32 %v970_v25, %v936_v28 }
 0x169   : > { %v1036_v30 = vadd.f32 %v1020_v29, %v986_v31 }
 0x16b   : > { %1052 = vst [vmem:[%s2408_s26 + $0x78] sm:$0xff] %v1036_v30 }
 0x16c   : > { %1731 = shalt.err (!%p1728_p9)
}
 0x16d   : > { %s1732_s14 = scalar_lea.hbm %s2610_s28, 2048  ;;  %s1736_s27 = scalar_lea.hbm %s2721_s3, 4096 }
 0x16e   : > { %p1733_p0 = scmp.ne.s32.totalorder %s2610_s28, %s1732_s14  ;;  %p1737_p12 = scmp.lt.s32.totalorder %s2610_s28, %s2721_s3 }
 0x16f   : > { %p1738_p5 = scmp.lt.s32.totalorder %s1736_s27, %s1732_s14 }
 0x170   : > { %p1734_p10 = pnand %p1733_p0, %p2722_p3 }
 0x171   : > { %p1739_p6 = por %p1738_p5, %p1737_p12 }
 0x172   : > { %p1735_p8 = pneg %p1734_p10 }
 0x174   : > { %p1740_p7 = pnand %p1739_p6, %p1735_p8 }
 0x176   : > { %1743 = shalt.err (!%p1740_p7)
}
 0x177   : > { %s1816_s19 = smov 512   ;;  %s1817_s17 = smov 32  }
 0x178   : > { %1403 = dma.vmem_to_hbm [thread:$0]  (%p2722_p3), %s2612_s0, 2048, %s2610_s28, %s1054_s22, %s1816_s19, %s1816_s19, %s1817_s17  }
 0x179 PF: > { %s2723_s18 = sld [smem:[#allocation30_spill]]  ;;  %s1083_s11 = sand.u32 1, %s1790_s30  }
 0x17a   : > { %s2724_s15 = sld [smem:[#allocation27_spill]]  ;;  %s1084_s23 = scalar_lea.sflag [#allocation4], %s1083_s11 }
 0x17f   : > { %p2725_p11 = scmp.ne.s32.totalorder %s2723_s18, 0 }
 0x180   : > { %p2726_p1 = scmp.ge.s32.totalorder %s2724_s15, 2 }
 0x182   : > { %p1435_p2 = pnand %p2726_p1, %p2725_p11 }
 0x184   : > { %p1436_p13 = pneg %p1435_p2 }
 0x186   : > { %1785 = dma.done.wait (%p1436_p13), %s1084_s23, 2048  }
 0x187   : > { %1787 = vsyncadd (%p1436_p13), %s1084_s23, 4294965248  ;;  %s2727_s12 = sld [smem:[#allocation28_spill]]  ;;  %s2730_s30 = smov %s1794_s10 }
 0x188   : > { %s2728_s26 = sld [smem:[#allocation26_spill]] }
 0x189   : > { %s2729_s11 = sld [smem:[#allocation29_spill]] }
 0x18d   : > { %p35_p4 = scmp.ge.s32.totalorder %s2727_s12, 4  }
 0x18e   : > { %s2731_s10 = smov %s2728_s26 }
 0x18f   :  { %37 = sbr.rel (!%p35_p4) target bundleno = 22 (0x16), region = 191 }
 0x194   :  { %1089 = vsyncpa [#allocation3], 1 }
 0x195   :  { %1091 = vsyncpa [#allocation3 + $0x1], 1 }
 0x196   :  { %1092 = vsyncpa [#allocation8], 1 }
 0x197   :  { %1094 = vsyncpa [#allocation8 + $0x1], 1 }
 0x198   :  { %1095 = vsyncpa [#allocation11], 1 }
 0x199   :  { %1097 = vsyncpa [#allocation11 + $0x1], 1 }
 0x19a   :  { %1098 = vsyncpa [#allocation14], 1 }
 0x19b   :  { %1100 = vsyncpa [#allocation14 + $0x1], 1 }
 0x19c   :  { %1101 = vsyncpa [#allocation17], 1 }
 0x19d   :  { %1103 = vsyncpa [#allocation17 + $0x1], 1 }
 0x19e   :  { %1104 = vsyncpa [#allocation4], 1 }
 0x19f   :  { %1106 = vsyncpa [#allocation4 + $0x1], 1 }
 0x1a0   :  { %1107 = vsyncpa [#allocation5], 1 }
 0x1a1   :  { %1109 = vsyncpa [#allocation5 + $0x1], 1 }

</bundles_post_ra>
